<compile_context>
chip_gen: v7x
topology: tpu7x:2x2x1
jax: 0.10.0
libtpu: 0.0.40
codegen_flags: <defaults>
</compile_context>

<pallas_src>
import math
import functools

import jax
import jax.numpy as jnp
from jax.experimental import pallas as pl
from jax.experimental.pallas import tpu as pltpu


def _mhsa_kernel(x_ref, wqkv_ref, bqkv_ref, wo_ref, bo_ref, o_ref, *,
                 num_heads, d_k, seq_len, batch_tile, compute_dtype,
                 approx_recip):
    TB, S, H, dk = batch_tile, seq_len, num_heads, d_k
    D = H * dk
    N = TB * S            # rows handled this grid step

    x = x_ref[...].astype(compute_dtype)                           # (N, D)

    # Single fused QKV projection (one big MXU push, f32 accumulation).
    # 1/sqrt(d_k) is already folded into the Q columns and the key bias is
    # dropped (cancels in softmax), so no per-score scaling happens below.
    qkv = jnp.dot(x, wqkv_ref[...],
                  preferred_element_type=jnp.float32) + bqkv_ref[...]  # (N, 3D)
    qkv3 = qkv.reshape(TB, S, 3 * D)      # last dim unchanged -> cheap reshape

    acc = jnp.zeros((N, D), jnp.float32)  # f32 register accumulator

    # Static head loop (H is small).  Each head is batched over the batch dim,
    # uses no transposes, no concatenates, and no VMEM scratch: the head
    # output is folded straight into the output projection via a sublane
    # slice of w_o.
    for h in range(H):
        lo = h * dk
        qh = qkv3[:, :, lo:lo + dk].astype(compute_dtype)            # (TB,S,dk)
        kh = qkv3[:, :, D + lo:D + lo + dk].astype(compute_dtype)
        vh = qkv3[:, :, 2 * D + lo:2 * D + lo + dk].astype(compute_dtype)

        # scores: contract last axis of BOTH operands (no explicit kh.T).
        s = jnp.einsum("bqd,bkd->bqk", qh, kh,
                       preferred_element_type=jnp.float32)           # (TB,S,S)

        # softmax over keys (f32 on the VPU/EUP).
        m = jnp.max(s, axis=-1, keepdims=True)
        e = jnp.exp(s - m)
        denom = jnp.sum(e, axis=-1, keepdims=True)
        if approx_recip:
            p = e * pl.reciprocal(denom, approx=True)   # EUP slot, ~free
        else:
            p = e / denom

        oh = jnp.einsum("bqk,bkd->bqd", p.astype(compute_dtype), vh,
                        preferred_element_type=jnp.float32)          # (TB,S,dk)

        # Output projection for this head: (dk, D) sublane slice of w_o,
        # accumulated in f32 registers (replaces the old VMEM scratch +
        # masked narrow stores + full re-load for a final (N,D)@(D,D)).
        wo_h = wo_ref[lo:lo + dk, :]                                  # (dk, D)
        acc = acc + jnp.dot(oh.reshape(N, dk).astype(compute_dtype), wo_h,
                            preferred_element_type=jnp.float32)

    o_ref[...] = (acc + bo_ref[...]).astype(o_ref.dtype)


def fuse_params(params, num_heads, compute_dtype=jnp.float32):
    """Fold per-projection params into the fused layout the kernel consumes.

      * w_q/w_k/w_v -> one (D, 3D) weight; b_q/b_v -> one (1, 3D) bias.
      * 1/sqrt(d_k) folded into the Q columns (no in-kernel score scaling).
      * b_k dropped (a per-query constant shift of every score cancels in
        softmax) -> its slot in the fused bias is zero.
      * Weights cast to compute_dtype (bf16 halves HBM->VMEM DMA bytes and
        VMEM footprint on v6e/v7x); biases stay f32 (added to f32 MXU acc).
    """
    d_model = params["w_q"].shape[0]
    assert d_model % num_heads == 0
    inv = 1.0 / math.sqrt(d_model // num_heads)
    w_qkv = jnp.concatenate(
        [params["w_q"] * inv, params["w_k"], params["w_v"]], axis=1)
    b_qkv = jnp.concatenate(
        [params["b_q"] * inv, jnp.zeros_like(params["b_k"]), params["b_v"]],
        axis=1)
    return {
        "w_qkv": w_qkv.astype(compute_dtype),
        "b_qkv": b_qkv.astype(jnp.float32),
        "w_o": params["w_o"].astype(compute_dtype),
        "b_o": params["b_o"].astype(jnp.float32),
    }


def _default_batch_tile(B, S):
    """Rows per grid step: prefer >=2 grid steps (DMA/compute overlap + v7x
    megacore), keep n_rows in the ~512-2048 sweet spot, keep the per-head
    (TB, S, S) f32 score tensor to a few MiB, and honor the (8, .) sublane
    rule for the (n_rows, D) block."""
    target_rows = 1024
    max_score_bytes = 4 << 20
    best_key, best_bt = None, B
    for bt in range(1, B + 1):
        if B % bt:
            continue
        rows = bt * S
        if rows % 8 != 0 and rows != B * S:
            continue                       # sublane-divisibility rule
        key = ((B // bt) >= 2,                                  # multi-step
               rows <= target_rows and bt * S * S * 4 <= max_score_bytes,
               rows)                                            # biggest tile
        if best_key is None or key > best_key:
            best_key, best_bt = key, bt
    return best_bt


def multi_head_self_attention(x, fused_params, *, num_heads, batch_tile=None,
                              approx_recip=True):
    """x: (B, S, D).  fused_params: output of fuse_params()."""
    B, S, D = x.shape
    assert D % num_heads == 0
    d_k = D // num_heads
    compute_dtype = fused_params["w_qkv"].dtype

    if batch_tile is None:
        batch_tile = _default_batch_tile(B, S)
    assert B % batch_tile == 0
    n_rows = batch_tile * S
    assert n_rows % 8 == 0 or n_rows == B * S, (
        "batch_tile*seq_len must be a multiple of 8 (or cover the full batch)")

    x2 = x.reshape(B * S, D)           # contiguous, free reshape in XLA

    kernel = functools.partial(
        _mhsa_kernel, num_heads=num_heads, d_k=d_k, seq_len=S,
        batch_tile=batch_tile, compute_dtype=compute_dtype,
        approx_recip=approx_recip)

    row_spec = pl.BlockSpec((n_rows, D), lambda i: (i, 0))
    # Constant-index weight/bias blocks (same tile on every grid step).
    wqkv_spec = pl.BlockSpec((D, 3 * D), lambda i: (0, 0))
    bqkv_spec = pl.BlockSpec((1, 3 * D), lambda i: (0, 0))
    wo_spec = pl.BlockSpec((D, D), lambda i: (0, 0))
    bo_spec = pl.BlockSpec((1, D), lambda i: (0, 0))

    x_bytes = x.dtype.itemsize
    w_bytes = fused_params["w_qkv"].dtype.itemsize
    flops = 8 * B * S * D * D + 4 * B * S * S * D
    transcendentals = B * num_heads * S * S
    bytes_accessed = (2 * B * S * D * x_bytes      # x in + out
                      + 4 * D * D * w_bytes        # w_qkv + w_o
                      + 4 * D * 4)                 # biases (f32)

    # Per-step VMEM estimate: double-buffered x/out blocks, weights, the f32
    # qkv intermediate, and one head's score/prob temporaries.  Only raise the
    # scoped-VMEM limit when the default would be exceeded (never at small
    # shapes); cap at 64 MiB so the setting is safe on v7x as well.
    vmem_est = (4 * n_rows * D * x_bytes
                + 2 * 4 * D * D * w_bytes
                + 3 * n_rows * D * 4
                + 2 * batch_tile * S * S * 4
                + 2 * n_rows * D * 4)
    compiler_kwargs = dict(dimension_semantics=("parallel",))
    if vmem_est > 24 * 1024 * 1024:
        compiler_kwargs["vmem_limit_bytes"] = min(
            int(1.5 * vmem_est), 64 * 1024 * 1024)

    out2 = pl.pallas_call(
        kernel,
        out_shape=jax.ShapeDtypeStruct((B * S, D), x.dtype),
        grid_spec=pltpu.PrefetchScalarGridSpec(
            num_scalar_prefetch=0,
            grid=(B // batch_tile,),
            in_specs=[row_spec, wqkv_spec, bqkv_spec, wo_spec, bo_spec],
            out_specs=row_spec,
        ),
        compiler_params=pltpu.CompilerParams(**compiler_kwargs),
        cost_estimate=pl.CostEstimate(flops=flops,
                                      transcendentals=transcendentals,
                                      bytes_accessed=bytes_accessed),
    )(x2,
      fused_params["w_qkv"], fused_params["b_qkv"],
      fused_params["w_o"], fused_params["b_o"])

    return out2.reshape(B, S, D)


def init_params(key, d_model):
    """nn.Linear-style init: U(-1/sqrt(fan_in), 1/sqrt(fan_in)).
    Weights stored as (in, out) so the kernel computes x @ W + b."""
    bound = 1.0 / math.sqrt(d_model)
    names = ["w_q", "b_q", "w_k", "b_k", "w_v", "b_v", "w_o", "b_o"]
    keys = jax.random.split(key, len(names))
    params = {}
    for i, name in enumerate(names):
        shape = (d_model, d_model) if name.startswith("w") else (1, d_model)
        params[name] = jax.random.uniform(
            keys[i], shape, dtype=jnp.float32, minval=-bound, maxval=bound)
    return params


def _reference(x, params, num_heads):
    """Plain-JAX reference mirroring the PyTorch forward (eval mode)."""
    B, S, D = x.shape
    d_k = D // num_heads
    q = x @ params["w_q"] + params["b_q"]
    k = x @ params["w_k"] + params["b_k"]
    v = x @ params["w_v"] + params["b_v"]
    q = q.reshape(B, S, num_heads, d_k).transpose(0, 2, 1, 3)
    k = k.reshape(B, S, num_heads, d_k).transpose(0, 2, 1, 3)
    v = v.reshape(B, S, num_heads, d_k).transpose(0, 2, 1, 3)
    scores = jnp.einsum("bhqd,bhkd->bhqk", q, k) / math.sqrt(d_k)
    w = jax.nn.softmax(scores, axis=-1)
    o = jnp.einsum("bhqk,bhkd->bhqd", w, v)
    o = o.transpose(0, 2, 1, 3).reshape(B, S, D)
    return o @ params["w_o"] + params["b_o"]


if __name__ == "__main__":
    batch, seq_len, d_model, num_heads = 2, 8, 32, 4

    key = jax.random.PRNGKey(0)
    k_x, k_p = jax.random.split(key)
    x = jax.random.normal(k_x, (batch, seq_len, d_model), dtype=jnp.float32)
    params = init_params(k_p, d_model)

    ref = _reference(x, params, num_heads)

    # f32 path, exact softmax normalization.
    fused_f32 = fuse_params(params, num_heads, compute_dtype=jnp.float32)
    out_exact = multi_head_self_attention(
        x, fused_f32, num_heads=num_heads, approx_recip=False)
    out_exact = jax.block_until_ready(out_exact)
    assert out_exact.shape == (batch, seq_len, d_model)
    assert jnp.allclose(out_exact, ref, atol=1e-4, rtol=1e-4), \
        "f32 exact mismatch vs reference"

    # f32 path, EUP approximate-reciprocal softmax denominator (default).
    out_f32 = multi_head_self_attention(x, fused_f32, num_heads=num_heads)
    out_f32 = jax.block_until_ready(out_f32)
    assert jnp.allclose(out_f32, ref, atol=2e-3, rtol=2e-3), \
        "f32 approx mismatch vs reference"

    # bf16 MXU-operand path (weights stored bf16 in HBM; softmax stays f32).
    fused_bf16 = fuse_params(params, num_heads, compute_dtype=jnp.bfloat16)
    out_bf16 = multi_head_self_attention(x, fused_bf16, num_heads=num_heads)
    out_bf16 = jax.block_until_ready(out_bf16)
    assert jnp.allclose(out_bf16, ref, atol=5e-2, rtol=5e-2), \
        "bf16 mismatch vs reference"

    print("KERNEL_OK")
</pallas_src>

<mosaic_0001>
module attributes {stable_mosaic.version = 11 : i64} {
  func.func @_mhsa_kernel(%arg0: i32, %arg1: memref<8x32xf32, #tpu.memory_space<vmem>>, %arg2: memref<32x96xf32, #tpu.memory_space<vmem>>, %arg3: memref<1x96xf32, #tpu.memory_space<vmem>>, %arg4: memref<32x32xf32, #tpu.memory_space<vmem>>, %arg5: memref<1x32xf32, #tpu.memory_space<vmem>>, %arg6: memref<8x32xf32, #tpu.memory_space<vmem>>) attributes {dimension_semantics = [#tpu.dimension_semantics<parallel>], iteration_bounds = array<i64: 2>, scalar_prefetch = 0 : i64, scratch_operands = 0 : i64, tpu.core_type = #tpu.core_type<tc>, window_params = [{transform_indices = @transform_0, window_bounds = array<i64: 8, 32>}, {pipeline_mode = #tpu.pipeline_mode<synchronous>, transform_indices = @transform_1, window_bounds = array<i64: 32, 96>}, {pipeline_mode = #tpu.pipeline_mode<synchronous>, transform_indices = @transform_2, window_bounds = array<i64: 1, 96>}, {pipeline_mode = #tpu.pipeline_mode<synchronous>, transform_indices = @transform_3, window_bounds = array<i64: 32, 32>}, {pipeline_mode = #tpu.pipeline_mode<synchronous>, transform_indices = @transform_4, window_bounds = array<i64: 1, 32>}, {transform_indices = @transform_5, window_bounds = array<i64: 8, 32>}]} {
    %c0 = arith.constant 0 : index
    %c0_0 = arith.constant 0 : index
    %0 = vector.load %arg1[%c0, %c0_0] : memref<8x32xf32, #tpu.memory_space<vmem>>, vector<8x32xf32>
    %c0_1 = arith.constant 0 : index
    %c0_2 = arith.constant 0 : index
    %1 = vector.load %arg2[%c0_1, %c0_2] : memref<32x96xf32, #tpu.memory_space<vmem>>, vector<32x96xf32>
    %cst = arith.constant dense<0.000000e+00> : vector<8x96xf32>
    %2 = tpu.matmul %0, %1, %cst {dimension_numbers = #tpu.dot_dimension_numbers<[1], [0], [0], [1], [0, 0, 1, 1], [], []>} : vector<8x32xf32>, vector<32x96xf32>, vector<8x96xf32> -> vector<8x96xf32>
    %c0_3 = arith.constant 0 : index
    %c0_4 = arith.constant 0 : index
    %3 = vector.load %arg3[%c0_3, %c0_4] : memref<1x96xf32, #tpu.memory_space<vmem>>, vector<1x96xf32>
    %4 = vector.broadcast %3 : vector<1x96xf32> to vector<8x96xf32>
    %5 = arith.addf %2, %4 : vector<8x96xf32>
    %6 = vector.shape_cast %5 : vector<8x96xf32> to vector<1x8x96xf32>
    %cst_5 = arith.constant 0.000000e+00 : f32
    %7 = vector.broadcast %cst_5 : f32 to vector<8x32xf32>
    %8 = vector.extract_strided_slice %6 {offsets = [0, 0, 0], sizes = [1, 8, 8], strides = [1, 1, 1]} : vector<1x8x96xf32> to vector<1x8x8xf32>
    %9 = vector.extract_strided_slice %6 {offsets = [0, 0, 32], sizes = [1, 8, 8], strides = [1, 1, 1]} : vector<1x8x96xf32> to vector<1x8x8xf32>
    %10 = vector.extract_strided_slice %6 {offsets = [0, 0, 64], sizes = [1, 8, 8], strides = [1, 1, 1]} : vector<1x8x96xf32> to vector<1x8x8xf32>
    "tpu.trace_start"() <{level = 10 : i32, message = "bqd,bkd->bqk"}> : () -> ()
    %cst_6 = arith.constant dense<0.000000e+00> : vector<1x8x8xf32>
    %11 = tpu.matmul %8, %9, %cst_6 {dimension_numbers = #tpu.dot_dimension_numbers<[2], [2], [1], [1], [0, 0, 0, 1, 1, 1], [0], [0]>} : vector<1x8x8xf32>, vector<1x8x8xf32>, vector<1x8x8xf32> -> vector<1x8x8xf32>
    "tpu.trace_stop"() : () -> ()
    %cst_7 = arith.constant dense<0xFF800000> : vector<1x8xf32>
    %12 = vector.multi_reduction <maximumf>, %11, %cst_7 [2] : vector<1x8x8xf32> to vector<1x8xf32>
    %13 = vector.shape_cast %12 : vector<1x8xf32> to vector<1x8x1xf32>
    %14 = vector.broadcast %13 : vector<1x8x1xf32> to vector<1x8x8xf32>
    %15 = arith.subf %11, %14 : vector<1x8x8xf32>
    %16 = math.exp %15 : vector<1x8x8xf32>
    %cst_8 = arith.constant dense<0.000000e+00> : vector<1x8xf32>
    %17 = vector.multi_reduction <add>, %16, %cst_8 [2] : vector<1x8x8xf32> to vector<1x8xf32>
    %18 = vector.shape_cast %17 : vector<1x8xf32> to vector<1x8x1xf32>
    %19 = vector.broadcast %18 : vector<1x8x1xf32> to vector<1x8x8xf32>
    %20 = arith.divf %16, %19 : vector<1x8x8xf32>
    "tpu.trace_start"() <{level = 10 : i32, message = "bqk,bkd->bqd"}> : () -> ()
    %cst_9 = arith.constant dense<0.000000e+00> : vector<1x8x8xf32>
    %21 = tpu.matmul %20, %10, %cst_9 {dimension_numbers = #tpu.dot_dimension_numbers<[2], [1], [1], [2], [0, 0, 0, 1, 1, 2], [0], [0]>} : vector<1x8x8xf32>, vector<1x8x8xf32>, vector<1x8x8xf32> -> vector<1x8x8xf32>
    "tpu.trace_stop"() : () -> ()
    %c0_10 = arith.constant 0 : index
    %c0_11 = arith.constant 0 : index
    %22 = vector.load %arg4[%c0_10, %c0_11] : memref<32x32xf32, #tpu.memory_space<vmem>>, vector<8x32xf32>
    %23 = vector.shape_cast %21 : vector<1x8x8xf32> to vector<8x8xf32>
    %cst_12 = arith.constant dense<0.000000e+00> : vector<8x32xf32>
    %24 = tpu.matmul %23, %22, %cst_12 {dimension_numbers = #tpu.dot_dimension_numbers<[1], [0], [0], [1], [0, 0, 1, 1], [], []>} : vector<8x8xf32>, vector<8x32xf32>, vector<8x32xf32> -> vector<8x32xf32>
    %25 = arith.addf %7, %24 : vector<8x32xf32>
    %26 = vector.extract_strided_slice %6 {offsets = [0, 0, 8], sizes = [1, 8, 8], strides = [1, 1, 1]} : vector<1x8x96xf32> to vector<1x8x8xf32>
    %27 = vector.extract_strided_slice %6 {offsets = [0, 0, 40], sizes = [1, 8, 8], strides = [1, 1, 1]} : vector<1x8x96xf32> to vector<1x8x8xf32>
    %28 = vector.extract_strided_slice %6 {offsets = [0, 0, 72], sizes = [1, 8, 8], strides = [1, 1, 1]} : vector<1x8x96xf32> to vector<1x8x8xf32>
    "tpu.trace_start"() <{level = 10 : i32, message = "bqd,bkd->bqk"}> : () -> ()
    %cst_13 = arith.constant dense<0.000000e+00> : vector<1x8x8xf32>
    %29 = tpu.matmul %26, %27, %cst_13 {dimension_numbers = #tpu.dot_dimension_numbers<[2], [2], [1], [1], [0, 0, 0, 1, 1, 1], [0], [0]>} : vector<1x8x8xf32>, vector<1x8x8xf32>, vector<1x8x8xf32> -> vector<1x8x8xf32>
    "tpu.trace_stop"() : () -> ()
    %cst_14 = arith.constant dense<0xFF800000> : vector<1x8xf32>
    %30 = vector.multi_reduction <maximumf>, %29, %cst_14 [2] : vector<1x8x8xf32> to vector<1x8xf32>
    %31 = vector.shape_cast %30 : vector<1x8xf32> to vector<1x8x1xf32>
    %32 = vector.broadcast %31 : vector<1x8x1xf32> to vector<1x8x8xf32>
    %33 = arith.subf %29, %32 : vector<1x8x8xf32>
    %34 = math.exp %33 : vector<1x8x8xf32>
    %cst_15 = arith.constant dense<0.000000e+00> : vector<1x8xf32>
    %35 = vector.multi_reduction <add>, %34, %cst_15 [2] : vector<1x8x8xf32> to vector<1x8xf32>
    %36 = vector.shape_cast %35 : vector<1x8xf32> to vector<1x8x1xf32>
    %37 = vector.broadcast %36 : vector<1x8x1xf32> to vector<1x8x8xf32>
    %38 = arith.divf %34, %37 : vector<1x8x8xf32>
    "tpu.trace_start"() <{level = 10 : i32, message = "bqk,bkd->bqd"}> : () -> ()
    %cst_16 = arith.constant dense<0.000000e+00> : vector<1x8x8xf32>
    %39 = tpu.matmul %38, %28, %cst_16 {dimension_numbers = #tpu.dot_dimension_numbers<[2], [1], [1], [2], [0, 0, 0, 1, 1, 2], [0], [0]>} : vector<1x8x8xf32>, vector<1x8x8xf32>, vector<1x8x8xf32> -> vector<1x8x8xf32>
    "tpu.trace_stop"() : () -> ()
    %c8 = arith.constant 8 : index
    %c0_17 = arith.constant 0 : index
    %40 = vector.load %arg4[%c8, %c0_17] : memref<32x32xf32, #tpu.memory_space<vmem>>, vector<8x32xf32>
    %41 = vector.shape_cast %39 : vector<1x8x8xf32> to vector<8x8xf32>
    %cst_18 = arith.constant dense<0.000000e+00> : vector<8x32xf32>
    %42 = tpu.matmul %41, %40, %cst_18 {dimension_numbers = #tpu.dot_dimension_numbers<[1], [0], [0], [1], [0, 0, 1, 1], [], []>} : vector<8x8xf32>, vector<8x32xf32>, vector<8x32xf32> -> vector<8x32xf32>
    %43 = arith.addf %25, %42 : vector<8x32xf32>
    %44 = vector.extract_strided_slice %6 {offsets = [0, 0, 16], sizes = [1, 8, 8], strides = [1, 1, 1]} : vector<1x8x96xf32> to vector<1x8x8xf32>
    %45 = vector.extract_strided_slice %6 {offsets = [0, 0, 48], sizes = [1, 8, 8], strides = [1, 1, 1]} : vector<1x8x96xf32> to vector<1x8x8xf32>
    %46 = vector.extract_strided_slice %6 {offsets = [0, 0, 80], sizes = [1, 8, 8], strides = [1, 1, 1]} : vector<1x8x96xf32> to vector<1x8x8xf32>
    "tpu.trace_start"() <{level = 10 : i32, message = "bqd,bkd->bqk"}> : () -> ()
    %cst_19 = arith.constant dense<0.000000e+00> : vector<1x8x8xf32>
    %47 = tpu.matmul %44, %45, %cst_19 {dimension_numbers = #tpu.dot_dimension_numbers<[2], [2], [1], [1], [0, 0, 0, 1, 1, 1], [0], [0]>} : vector<1x8x8xf32>, vector<1x8x8xf32>, vector<1x8x8xf32> -> vector<1x8x8xf32>
    "tpu.trace_stop"() : () -> ()
    %cst_20 = arith.constant dense<0xFF800000> : vector<1x8xf32>
    %48 = vector.multi_reduction <maximumf>, %47, %cst_20 [2] : vector<1x8x8xf32> to vector<1x8xf32>
    %49 = vector.shape_cast %48 : vector<1x8xf32> to vector<1x8x1xf32>
    %50 = vector.broadcast %49 : vector<1x8x1xf32> to vector<1x8x8xf32>
    %51 = arith.subf %47, %50 : vector<1x8x8xf32>
    %52 = math.exp %51 : vector<1x8x8xf32>
    %cst_21 = arith.constant dense<0.000000e+00> : vector<1x8xf32>
    %53 = vector.multi_reduction <add>, %52, %cst_21 [2] : vector<1x8x8xf32> to vector<1x8xf32>
    %54 = vector.shape_cast %53 : vector<1x8xf32> to vector<1x8x1xf32>
    %55 = vector.broadcast %54 : vector<1x8x1xf32> to vector<1x8x8xf32>
    %56 = arith.divf %52, %55 : vector<1x8x8xf32>
    "tpu.trace_start"() <{level = 10 : i32, message = "bqk,bkd->bqd"}> : () -> ()
    %cst_22 = arith.constant dense<0.000000e+00> : vector<1x8x8xf32>
    %57 = tpu.matmul %56, %46, %cst_22 {dimension_numbers = #tpu.dot_dimension_numbers<[2], [1], [1], [2], [0, 0, 0, 1, 1, 2], [0], [0]>} : vector<1x8x8xf32>, vector<1x8x8xf32>, vector<1x8x8xf32> -> vector<1x8x8xf32>
    "tpu.trace_stop"() : () -> ()
    %c16 = arith.constant 16 : index
    %c0_23 = arith.constant 0 : index
    %58 = vector.load %arg4[%c16, %c0_23] : memref<32x32xf32, #tpu.memory_space<vmem>>, vector<8x32xf32>
    %59 = vector.shape_cast %57 : vector<1x8x8xf32> to vector<8x8xf32>
    %cst_24 = arith.constant dense<0.000000e+00> : vector<8x32xf32>
    %60 = tpu.matmul %59, %58, %cst_24 {dimension_numbers = #tpu.dot_dimension_numbers<[1], [0], [0], [1], [0, 0, 1, 1], [], []>} : vector<8x8xf32>, vector<8x32xf32>, vector<8x32xf32> -> vector<8x32xf32>
    %61 = arith.addf %43, %60 : vector<8x32xf32>
    %62 = vector.extract_strided_slice %6 {offsets = [0, 0, 24], sizes = [1, 8, 8], strides = [1, 1, 1]} : vector<1x8x96xf32> to vector<1x8x8xf32>
    %63 = vector.extract_strided_slice %6 {offsets = [0, 0, 56], sizes = [1, 8, 8], strides = [1, 1, 1]} : vector<1x8x96xf32> to vector<1x8x8xf32>
    %64 = vector.extract_strided_slice %6 {offsets = [0, 0, 88], sizes = [1, 8, 8], strides = [1, 1, 1]} : vector<1x8x96xf32> to vector<1x8x8xf32>
    "tpu.trace_start"() <{level = 10 : i32, message = "bqd,bkd->bqk"}> : () -> ()
    %cst_25 = arith.constant dense<0.000000e+00> : vector<1x8x8xf32>
    %65 = tpu.matmul %62, %63, %cst_25 {dimension_numbers = #tpu.dot_dimension_numbers<[2], [2], [1], [1], [0, 0, 0, 1, 1, 1], [0], [0]>} : vector<1x8x8xf32>, vector<1x8x8xf32>, vector<1x8x8xf32> -> vector<1x8x8xf32>
    "tpu.trace_stop"() : () -> ()
    %cst_26 = arith.constant dense<0xFF800000> : vector<1x8xf32>
    %66 = vector.multi_reduction <maximumf>, %65, %cst_26 [2] : vector<1x8x8xf32> to vector<1x8xf32>
    %67 = vector.shape_cast %66 : vector<1x8xf32> to vector<1x8x1xf32>
    %68 = vector.broadcast %67 : vector<1x8x1xf32> to vector<1x8x8xf32>
    %69 = arith.subf %65, %68 : vector<1x8x8xf32>
    %70 = math.exp %69 : vector<1x8x8xf32>
    %cst_27 = arith.constant dense<0.000000e+00> : vector<1x8xf32>
    %71 = vector.multi_reduction <add>, %70, %cst_27 [2] : vector<1x8x8xf32> to vector<1x8xf32>
    %72 = vector.shape_cast %71 : vector<1x8xf32> to vector<1x8x1xf32>
    %73 = vector.broadcast %72 : vector<1x8x1xf32> to vector<1x8x8xf32>
    %74 = arith.divf %70, %73 : vector<1x8x8xf32>
    "tpu.trace_start"() <{level = 10 : i32, message = "bqk,bkd->bqd"}> : () -> ()
    %cst_28 = arith.constant dense<0.000000e+00> : vector<1x8x8xf32>
    %75 = tpu.matmul %74, %64, %cst_28 {dimension_numbers = #tpu.dot_dimension_numbers<[2], [1], [1], [2], [0, 0, 0, 1, 1, 2], [0], [0]>} : vector<1x8x8xf32>, vector<1x8x8xf32>, vector<1x8x8xf32> -> vector<1x8x8xf32>
    "tpu.trace_stop"() : () -> ()
    %c24 = arith.constant 24 : index
    %c0_29 = arith.constant 0 : index
    %76 = vector.load %arg4[%c24, %c0_29] : memref<32x32xf32, #tpu.memory_space<vmem>>, vector<8x32xf32>
    %77 = vector.shape_cast %75 : vector<1x8x8xf32> to vector<8x8xf32>
    %cst_30 = arith.constant dense<0.000000e+00> : vector<8x32xf32>
    %78 = tpu.matmul %77, %76, %cst_30 {dimension_numbers = #tpu.dot_dimension_numbers<[1], [0], [0], [1], [0, 0, 1, 1], [], []>} : vector<8x8xf32>, vector<8x32xf32>, vector<8x32xf32> -> vector<8x32xf32>
    %79 = arith.addf %61, %78 : vector<8x32xf32>
    %c0_31 = arith.constant 0 : index
    %c0_32 = arith.constant 0 : index
    %80 = vector.load %arg5[%c0_31, %c0_32] : memref<1x32xf32, #tpu.memory_space<vmem>>, vector<1x32xf32>
    %81 = vector.broadcast %80 : vector<1x32xf32> to vector<8x32xf32>
    %82 = arith.addf %79, %81 : vector<8x32xf32>
    %c0_33 = arith.constant 0 : index
    %c0_34 = arith.constant 0 : index
    %83 = vector.load %arg6[%c0_33, %c0_34] : memref<8x32xf32, #tpu.memory_space<vmem>>, vector<8x32xf32>
    tpu.vector_store %arg6[%c0_33, %c0_34], %82 {strides = array<i32>} : memref<8x32xf32, #tpu.memory_space<vmem>>, vector<8x32xf32>,
    return
  }
  func.func @transform_0(%arg0: i32) -> (i32, i32) {
    %c0_i32 = arith.constant 0 : i32
    %c0_i32_0 = arith.constant 0 : i32
    return %arg0, %c0_i32 : i32, i32
  }
  func.func @transform_1(%arg0: i32) -> (i32, i32) {
    %c0_i32 = arith.constant 0 : i32
    %c0_i32_0 = arith.constant 0 : i32
    %c0_i32_1 = arith.constant 0 : i32
    return %c0_i32, %c0_i32_0 : i32, i32
  }
  func.func @transform_2(%arg0: i32) -> (i32, i32) {
    %c0_i32 = arith.constant 0 : i32
    %c0_i32_0 = arith.constant 0 : i32
    %c0_i32_1 = arith.constant 0 : i32
    return %c0_i32, %c0_i32_0 : i32, i32
  }
  func.func @transform_3(%arg0: i32) -> (i32, i32) {
    %c0_i32 = arith.constant 0 : i32
    %c0_i32_0 = arith.constant 0 : i32
    %c0_i32_1 = arith.constant 0 : i32
    return %c0_i32, %c0_i32_0 : i32, i32
  }
  func.func @transform_4(%arg0: i32) -> (i32, i32) {
    %c0_i32 = arith.constant 0 : i32
    %c0_i32_0 = arith.constant 0 : i32
    %c0_i32_1 = arith.constant 0 : i32
    return %c0_i32, %c0_i32_0 : i32, i32
  }
  func.func @transform_5(%arg0: i32) -> (i32, i32) {
    %c0_i32 = arith.constant 0 : i32
    %c0_i32_0 = arith.constant 0 : i32
    return %arg0, %c0_i32 : i32, i32
  }
}

</mosaic_0001>

<bundles_post_ra>
// kernel: tpu_custom_call.1
= control target key start
LH: loop header
LB: loop body
LE: loop exit
PB: predicated region body
PF: predicated region fallthrough
CT: control target
= control target key end

     0   :  { %10 = vsyncpa [#allocation3], 0  ;;  %s2190_s0 = inlined_call_operand.hbm [shape: f32[16,32], index: 0, kind: input, shape index: {}]   ;;  %s2191_s1 = inlined_call_operand.hbm [shape: f32[32,96], index: 1, kind: input, shape index: {}]   ;;  %s2192_s2 = inlined_call_operand.vmem [shape: f32[1,96], index: 2, kind: input, shape index: {}]   ;;  %s2193_s3 = inlined_call_operand.hbm [shape: f32[32,32], index: 3, kind: input, shape index: {}]   ;;  %s2194_s4 = inlined_call_operand.vmem [shape: f32[1,32], index: 4, kind: input, shape index: {}]   ;;  %s2195_s5 = inlined_call_operand.hbm [shape: f32[16,32], index: 5, kind: output, shape index: {}]  }
   0x1   :  { %12 = vsyncpa [#allocation3 + $0x1], 0 }
   0x2   :  { %13 = vsyncpa [#allocation6], 0 }
   0x3   :  { %14 = vsyncpa [#allocation4], 0 }
   0x4   :  { %16 = vsyncpa [#allocation4 + $0x1], 0  ;;  %s1873_s18 = smov 0   ;;  %s1875_s19 = smov 0  }
   0x5   :  { %s1877_s20 = smov 0   ;;  %s1879_s21 = smov 0  }
   0x6 LB: > { %s1894_s22 = sadd.s32 4294967295, %s1821_s21   ;;  %s1425_s23 = sadd.s32 4294967294, %s1821_s21   ;;  %s1821_s21 = sphi %s1879_s21, %s2215_s21   ;;  %s1817_s20 = sphi %s1877_s20, %s2214_s20   ;;  %s1813_s19 = sphi %s1875_s19, %s2213_s19   ;;  %s1809_s18 = sphi %s1873_s18, %s2212_s18  }
   0x7   : > { %p42_p0 = scmp.ne.s32.totalorder %s1813_s19, %s1809_s18  ;;  %p2196_p1 = scmp.eq.s32.totalorder %s1894_s22, 0 }
   0x8   : > { %p156_p3 = scmp.eq.s32.totalorder %s1425_s23, 1  ;;  %p1426_p5 = scmp.ge.s32.totalorder %s1821_s21, 1 }
   0x9   : > { %p1903_p4 = por %p2196_p1, %p42_p0  ;;  %p163_p7 = scmp.lt.s32.totalorder %s1821_s21, 3 }
   0xa   : > { %p1908_p6 = por %p156_p3, %p42_p0  ;;  %s1823_s27 = smov [#allocation5]  }
   0xb   : > { %s2199_s24 = scalar_select %p1903_p4, 1, 0 }
   0xc   : > { %s2200_s25 = scalar_select %p1908_p6, 1, 0 }
   0xd   : > { %p1913_p8 = pnand %p1426_p5, %p163_p7  ;;  %s175_s28 = sshll.u32 %s1823_s27, 4  ;;  %s1917_s28 = int_to_ptr.vmem [resolvable:$true] %s175_s28 }
   0xe   : > { %s1824_s30 = smov [#allocation7]   ;;  %s1665_s9 = scalar_lea.hbm %s2191_s1, 512 }
   0xf   : > { %p1578_p9 = pneg %p1913_p8  ;;  %s191_s6 = sshll.u32 %s1824_s30, 4  ;;  %s1928_s6 = int_to_ptr.vmem [resolvable:$true] %s191_s6 }
  0x10   : > { %p1666_p12 = scmp.ne.s32.totalorder %s2191_s1, %s1665_s9  ;;  %p1672_p5 = scmp.lt.u32.totalorder %s1665_s9, %s2191_s1 }
  0x11   : > { %p1924_p11 = pnand %p1578_p9, %p2196_p1 }
  0x13   : > { %p1667_p13 = pneg %p1924_p11 }
  0x15   : > { %p1668_p0 = pnand %p1667_p13, %p1666_p12 }
  0x17   : > { %p1669_p3 = pneg %p1668_p0 }
  0x19   : > { %p1674_p7 = pnand %p1672_p5, %p1669_p3 }
  0x1b   : > { %1677 = shalt.err (!%p1674_p7)
}
  0x1c   : > { %s1678_s14 = scalar_lea.vmem %s1917_s28, 512  ;;  %p1686_p2 = scmp.lt.s32.totalorder %s1917_s28, %s1917_s28 }
  0x1d   : > { %p1679_p9 = scmp.ne.s32.totalorder %s1917_s28, %s1678_s14  ;;  %p1687_p12 = scmp.lt.s32.totalorder %s1678_s14, %s1678_s14 }
  0x1f   : > { %p1681_p10 = pnand %p1679_p9, %p1667_p13  ;;  %p1688_p0 = por %p1687_p12, %p1686_p2 }
  0x21   : > { %p1682_p1 = pneg %p1681_p10 }
  0x23   : > { %p1689_p6 = pnand %p1688_p0, %p1682_p1 }
  0x25   : > { %1692 = shalt.err (!%p1689_p6)
}
  0x26   : > { %s1825_s15 = smov 128   ;;  %s1826_s16 = smov 8  }
  0x27   : > { %1581 = dma.hbm_to_vmem [thread:$0]  (!%p1924_p11), %s2191_s1, 512, %s1917_s28, [#allocation6], %s1825_s15, %s1825_s15, %s1826_s16  }
  0x28   : > { %s1693_s7 = scalar_lea.hbm %s2193_s3, 512 }
  0x29   : > { %p1694_p2 = scmp.ne.s32.totalorder %s2193_s3, %s1693_s7  ;;  %p1700_p10 = scmp.lt.u32.totalorder %s1693_s7, %s2193_s3 }
  0x2b   : > { %p1696_p1 = pnand %p1694_p2, %p1667_p13 }
  0x2d   : > { %p1697_p6 = pneg %p1696_p1 }
  0x2f   : > { %p1702_p3 = pnand %p1700_p10, %p1697_p6 }
  0x31   : > { %1705 = shalt.err (!%p1702_p3)
}
  0x32   : > { %s1706_s28 = scalar_lea.vmem %s1928_s6, 512  ;;  %p1714_p12 = scmp.lt.s32.totalorder %s1928_s6, %s1928_s6 }
  0x33   : > { %p1707_p5 = scmp.ne.s32.totalorder %s1928_s6, %s1706_s28  ;;  %p1715_p0 = scmp.lt.s32.totalorder %s1706_s28, %s1706_s28 }
  0x35   : > { %p1709_p7 = pnand %p1707_p5, %p1667_p13  ;;  %p1716_p2 = por %p1715_p0, %p1714_p12 }
  0x37   : > { %p1710_p9 = pneg %p1709_p7 }
  0x39   : > { %p1717_p1 = pnand %p1716_p2, %p1710_p9 }
  0x3b   : > { %1720 = shalt.err (!%p1717_p1)
}
  0x3c   : > { %1584 = dma.hbm_to_vmem [thread:$0]  (!%p1924_p11), %s2193_s3, 512, %s1928_s6, [#allocation6], %s1825_s15, %s1825_s15, %s1826_s16  }
  0x3d   : > { %s1983_s14 = sadd.s32 1, %s1821_s21   ;;  %s29_s29 = sadd.s32 1, %s1817_s20 }
  0x3e   : > { %s26_s17 = ssub.s32 %s1821_s21, %s1983_s14  ;;  %p36_p13 = scmp.ne.s32.totalorder %s1817_s20, %s1813_s19 }
  0x3f   : > { %p27_p6 = scmp.eq.s32.totalorder %s26_s17, 0  ;;  %p37_p10 = scmp.eq.s32.totalorder %s1821_s21, 0 }
  0x40   : > { %p2203_p3 = scmp.eq.s32.totalorder %s1894_s22, 1  ;;  %p1595_p7 = scmp.lt.s32.totalorder %s1821_s21, 2 }
  0x41   : > { %s1999_s27 = scalar_select %p27_p6, %s1817_s20, %s29_s29  }
  0x42   : > { %p1993_p5 = por %p2203_p3, %p36_p13  ;;  %p38_p9 = por %p37_p10, %p36_p13 }
  0x43   : > { %s208_s30 = sand.u32 1, %s1817_s20   ;;  %s1431_s6 = sshll.u32 %s1821_s21, 7 }
  0x44   : > { %s2204_s23 = scalar_select %p1993_p5, 1, 0 }
  0x45   : > { %s1430_s7 = sshll.u32 %s208_s30, 3  ;;  %s2006_s8 = scalar_lea.hbm %s2190_s0, %s1431_s6 }
  0x46   : > { %s212_s9 = scalar_lea.vmem [#allocation2], %s1430_s7  ;;  %p2010_p11 = pnand %p1595_p7, %p38_p9 }
  0x47   : > { %s219_s10 = sshll.u32 %s212_s9, 4  ;;  %s209_s28 = scalar_lea.sflag [#allocation3], %s208_s30  ;;  %s2008_s10 = int_to_ptr.vmem [resolvable:$true] %s219_s10 }
  0x48   : > { %s1721_s12 = scalar_lea.hbm %s2006_s8, 128  ;;  %p1723_p0 = pneg %p2010_p11 }
  0x49   : > { %p1722_p12 = scmp.ne.s32.totalorder %s2006_s8, %s1721_s12  ;;  %s1726_s17 = scalar_lea.hbm %s2190_s0, 256 }
  0x4a   : > { %p1727_p13 = scmp.lt.u32.totalorder %s2006_s8, %s2190_s0  ;;  %p1728_p6 = scmp.lt.u32.totalorder %s1726_s17, %s1721_s12 }
  0x4b   : > { %p1724_p2 = pnand %p1723_p0, %p1722_p12  ;;  %p1730_p3 = scmp.lt.u32.totalorder %s1721_s12, %s2006_s8 }
  0x4c   : > { %p1729_p10 = por %p1728_p6, %p1727_p13 }
  0x4d   : > { %p1725_p1 = pneg %p1724_p2 }
  0x4e   : > { %p1731_p7 = por %p1730_p3, %p1729_p10 }
  0x50   : > { %p1732_p9 = pnand %p1731_p7, %p1725_p1 }
  0x52   : > { %1735 = shalt.err (!%p1732_p9)
}
  0x53   : > { %s1736_s30 = scalar_lea.vmem %s2008_s10, 128  ;;  %s1827_s15 = smov [#allocation2]  }
  0x54   : > { %p1737_p12 = scmp.ne.s32.totalorder %s2008_s10, %s1736_s30  ;;  %s1741_s16 = sshll.u32 %s1827_s15, 4  ;;  %s1742_s16 = int_to_ptr.vmem [resolvable:$false] %s1741_s16 }
  0x55   : > { %s1743_s9 = scalar_lea.vmem %s1742_s16, 256  ;;  %p1744_p4 = scmp.lt.s32.totalorder %s2008_s10, %s1742_s16 }
  0x56   : > { %p1739_p2 = pnand %p1737_p12, %p1723_p0  ;;  %p1745_p13 = scmp.lt.s32.totalorder %s1743_s9, %s1736_s30 }
  0x58   : > { %p1740_p5 = pneg %p1739_p2  ;;  %p1746_p6 = por %p1745_p13, %p1744_p4 }
  0x5a   : > { %p1747_p10 = pnand %p1746_p6, %p1740_p5 }
  0x5c   : > { %1750 = shalt.err (!%p1747_p10)
}
  0x5d   : > { %1588 = dma.hbm_to_vmem [thread:$0]  (!%p2010_p11), %s2006_s8, 128, %s2008_s10, %s209_s28  }
  0x5e   : > { %228 = sbr.rel (%p1913_p8) target bundleno = 2691 (0xa83), region = 40  ;;  %s2042_s12 = sand.u32 (!%p1913_p8), 1, %s1813_s19  }
  0x5f   : > { %s1433_s13 = sshll.u32 (!%p1913_p8), %s2042_s12, 3  ;;  %s231_s29 = scalar_lea.sflag (!%p1913_p8), [#allocation3], %s2042_s12 }
  0x60   : > { %s234_s17 = scalar_lea.vmem (!%p1913_p8), [#allocation2], %s1433_s13  ;;  %p2206_p4 = scmp.ne.s32.totalorder (!%p1913_p8), %s2199_s24, 0 }
  0x65   : > { %1796 = dma.done.wait (%p2206_p4), %s231_s29, 128  }
  0x66   : > { %1798 = vsyncadd (%p2206_p4), %s231_s29, 4294967168  ;;  %p2207_p5 = scmp.eq.s32.totalorder %s1894_s22, 0 }
  0x68   : > { %1800 = dma.done.wait (%p2207_p5), [#allocation6], 1024   ;;  %p2208_p8 = pmov %p2207_p5 }
  0x69   : > { %v1828_v0 = vmov 0.0|0.0   ;;  %vm1829_vm0 = vmmov 0   ;;  %v1830_v1 = vmov 0.0   ;;  %v270_v2 = vld [vmem:[#allocation5] sm:$0xff]  ;;  %v271_v3 = vld [vmem:[#allocation5 + $0x8] sm:$0xff]  ;;  %v272_v4 = vld [vmem:[#allocation5 + $0x10] sm:$0xff] }
  0x6a   : > { %1802 = vsyncadd (%p2208_p8), [#allocation6], 4294966272  ;;  %1560 = vmatprep.subr.bf16.mxu0 %v1828_v0  ;;  %1497 = vmatprep.mubr.msk.f32.mxu0 %vm1829_vm0, %v1830_v1  ;;  %v1561_v5 = vpack.c.bf16 %v271_v3, %v270_v2  ;;  %v273_v6 = vld [vmem:[#allocation5 + $0x18] sm:$0xff]  ;;  %vm281_vm1 = vcmask 261120   ;;  %v1437_v9 = vld [vmem:[%s2192_s2] ss:$0 sm:$0xff] }
  0x6b   : > { %1500 = vmatprep.subr.mxu1 %v1830_v1  ;;  %1502 = vmatprep.mubr.msk.f32.mxu1 %vm1829_vm0, %v1830_v1  ;;  %v1564_v7 = vpack.c.bf16 %v273_v6, %v272_v4  ;;  %v269_v8 = vld [vmem:[%s234_s17] sm:$0xff]  ;;  %s1831_s8 = smov 120   ;;  %s1832_s10 = smov 96   ;;  %vm358_vm2 = vcmask 64512   ;;  %v686_v32 = vld [vmem:[#allocation7 + $0x8] sm:$0xff]  ;;  %v520_v41 = vld [vmem:[#allocation7] sm:$0xff] }
  0x6c   : > { %1562 = vmatpush3.bf16.msra.mxu0 %v1561_v5  ;;  %s1833_s11 = smov 88   ;;  %s1834_s28 = smov 56   ;;  %v998_v4 = vld [vmem:[#allocation7 + $0x10] sm:$0xff] }
  0x6d   : > { %1563 = vmatprep.subr.bf16.mxu0 %v1828_v0  ;;  %s1835_s7 = smov 64   ;;  %s1836_s6 = smov 80  }
  0x6e   : > { %s1837_s30 = smov 112   ;;  %s1838_s15 = smov 72  }
  0x6f   : > { %s1839_s16 = smov 104   ;;  %s1840_s9 = smov 48  }
  0x70   : > { %1565 = vmatpush3.bf16.msra.mxu0 %v1564_v7  ;;  %s1841_s29 = smov 40   ;;  %s1457_s26 = sshll.u32 %s1894_s22, 7 }
  0x71   : > { %1510 = vmatprep.subr.mxu0 %v1830_v1  ;;  %p2209_p0 = scmp.ne.s32.totalorder %s2204_s23, 0 }
  0x73   : > { %1498 = vmatmul.mubr.msk.f32.vlgmr.msra.gmra.mrb[0].mxu0 %vm281_vm1, %v269_v8 }
  0x74   : > { %1512 = vmatprep.mubr.msk.f32.mxu0 %vm1829_vm0, %v1830_v1 }
 0x146   : > { %v351_v10 = vpop.f32.mrb[0].mxu0 }
 0x147   : > { %v2068_v11 = vadd.f32 %v1437_v9, %v351_v10  ;;  %v1499_v12 = vpop.f32.mrb[1].mxu0 }
 0x149   : > { %521 = vrot.lane.b32.xlu1 %v2068_v11, %s1831_s8  ;;  %356 = vrot.lane.b32.xlu0 %v2068_v11, %s1832_s10  ;;  %s268_s8 = scalar_lea.vmem [#allocation8], %s1433_s13  ;;  %s1842_s13 = smov [#allocation8]  }
 0x14a   : > { %s1336_s10 = sshll.u32 %s268_s8, 4  ;;  %s2147_s10 = int_to_ptr.vmem [resolvable:$true] %s1336_s10 }
 0x14b   : > { %s1751_s22 = scalar_lea.vmem %s2147_s10, 128 }
 0x14c   : > { %p1752_p11 = scmp.ne.s32.totalorder %s2147_s10, %s1751_s22 }
 0x14d   : > { %523 = vrot.lane.b32.xlu0 %v2068_v11, %s1833_s11 }
 0x14e   : > { %p1753_p1 = pnand %p1752_p11, %p2209_p0 }
 0x150   : > { %p1754_p3 = pneg %p1753_p1 }
 0x1bb   : > { %v357_v13 = vpop.permute.xlu0 %356  ;;  %v522_v15 = vpop.permute.xlu1 %521 }
 0x1bc   : > { %1501 = vmatpush3.xpose.msk.msra.mxu1 %vm358_vm2, %v357_v13 }
 0x1bd   : > { %1505 = vmatprep.subr.mxu1 %v1830_v1 }
 0x1bf   : > { %1503 = vmatmul.mubr.msk.f32.vlgmr.msra.gmra.mrb[0].mxu1 %vm358_vm2, %v2068_v11  ;;  %v524_v14 = vpop.permute.xlu0 %523 }
 0x1c0   : > { %1511 = vmatpush3.xpose.msk.msra.mxu0 %vm358_vm2, %v524_v14  ;;  %1507 = vmatprep.mubr.msk.f32.mxu1 %vm1829_vm0, %v1830_v1 }
 0x1c1   : > { %1520 = vmatprep.subr.mxu0 %v1830_v1 }
 0x1c3   : > { %1513 = vmatmul.mubr.msk.f32.vlgmr.msra.gmra.mrb[2].mxu0 %vm358_vm2, %v522_v15 }
 0x1c4   : > { %1522 = vmatprep.mubr.msk.f32.mxu0 %vm1829_vm0, %v1830_v1  ;;  %1521 = vmatpush3.msra.mxu0 %v686_v32 }
 0x1c5   : > { %1530 = vmatprep.subr.mxu0 %v1830_v1 }
 0x292   : > { %v429_v16 = vpop.f32.mrb[0].mxu1 }
 0x293   : > { %v1504_v17 = vpop.f32.mrb[1].mxu1  ;;  %v433_v18 = vsel %vm358_vm2, %v429_v16, -inf }
 0x294   : > { %434 = vmax.xlane.f32.xlu1 %v433_v18 }
 0x296   : > { %v595_v19 = vpop.f32.mrb[2].mxu0 }
 0x297   : > { %v1514_v20 = vpop.f32.mrb[3].mxu0  ;;  %v599_v21 = vsel %vm358_vm2, %v595_v19, -inf }
 0x298   : > { %600 = vmax.xlane.f32.xlu0 %v599_v21 }
 0x321   : > { %v435_v22 = vpop.xlane.xlu1 %434 }
 0x322   : > { %v436_v23 = vsub.f32 %v429_v16, %v435_v22 }
 0x324   : > { %v437_v24 = vmul.f32 1.442695, %v436_v23 }
 0x325   : > { %v601_v25 = vpop.xlane.xlu0 %600 }
 0x326   : > { %1649 = vpow2.f32 %v437_v24  ;;  %v602_v26 = vsub.f32 %v595_v19, %v601_v25  ;;  %v1455_v25 = vld [vmem:[%s2194_s4] ss:$0 sm:$0xff] }
 0x328   : > { %v603_v27 = vmul.f32 1.442695, %v602_v26 }
 0x32a   : > { %1651 = vpow2.f32 %v603_v27 }
 0x330   : > { %v1650_v28 = vpop.eup %1649 }
 0x331   : > { %v439_v29 = vsel %vm358_vm2, %v1650_v28, 0.0 }
 0x332   : > { %440 = vadd.xlane.f32.xlu0 %v439_v29 }
 0x334   : > { %v1652_v30 = vpop.eup %1651 }
 0x335   : > { %v605_v31 = vsel %vm358_vm2, %v1652_v30, 0.0 }
 0x336   : > { %606 = vadd.xlane.f32.xlu1 %v605_v31 }
 0x347   : > { %610 = vrot.lane.b32.xlu1 %v2068_v11, %s1834_s28 }
 0x348   : > { %444 = vrot.lane.b32.xlu0 %v2068_v11, %s1835_s7  ;;  %s2145_s7 = scalar_lea.hbm %s2195_s5, %s1457_s26 }
 0x34b   : > { %835 = vrot.lane.b32.xlu1 %v2068_v11, %s1836_s6  ;;  %s1323_s6 = scalar_lea.sflag [#allocation4], %s2042_s12 }
 0x34c   : > { %833 = vrot.lane.b32.xlu0 %v2068_v11, %s1837_s30  ;;  %s1755_s30 = sshll.u32 %s1842_s13, 4  ;;  %s1756_s30 = int_to_ptr.vmem [resolvable:$false] %s1755_s30 }
 0x34d   : > { %p1758_p7 = scmp.lt.s32.totalorder %s2147_s10, %s1756_s30 }
 0x3bf   : > { %v441_v33 = vpop.xlane.xlu0 %440 }
 0x3c0   : > { %1653 = vrcp.f32 %v441_v33 }
 0x3c3   : > { %v607_v34 = vpop.xlane.xlu1 %606  ;;  %v445_v35 = vpop.permute.xlu0 %444 }
 0x3c4   : > { %1655 = vrcp.f32 %v607_v34  ;;  %1506 = vmatpush3.msra.mxu1 %v445_v35 }
 0x3c5   : > { %1515 = vmatprep.subr.mxu1 %v1830_v1 }
 0x3c7   : > { %v611_v38 = vpop.permute.xlu1 %610  ;;  %v834_v47 = vpop.permute.xlu0 %833 }
 0x3ca   : > { %v1654_v36 = vpop.eup %1653 }
 0x3cb   : > { %v443_v37 = vmul.f32 %v1654_v36, %v1650_v28  ;;  %v836_v45 = vpop.permute.xlu1 %835 }
 0x3cd   : > { %1508 = vmatmul.mubr.msk.f32.vlgmr.msra.gmra.mrb[2].mxu1 %vm358_vm2, %v443_v37 }
 0x3ce   : > { %v1656_v39 = vpop.eup %1655  ;;  %1516 = vmatpush3.msra.mxu1 %v611_v38  ;;  %1517 = vmatprep.mubr.msk.f32.mxu1 %vm1829_vm0, %v1830_v1 }
 0x3cf   : > { %v609_v40 = vmul.f32 %v1656_v39, %v1652_v30  ;;  %1525 = vmatprep.subr.mxu1 %v1830_v1 }
 0x3d1   : > { %1518 = vmatmul.mubr.msk.f32.vlgmr.msra.gmra.mrb[4].mxu1 %vm358_vm2, %v609_v40 }
 0x3d2   : > { %1527 = vmatprep.mubr.msk.f32.mxu1 %vm1829_vm0, %v1830_v1  ;;  %1526 = vmatpush3.msra.mxu1 %v520_v41 }
 0x3d3   : > { %1535 = vmatprep.subr.mxu1 %v1830_v1 }
 0x4a0   : > { %v516_v42 = vpop.f32.mrb[2].mxu1 }
 0x4a1   : > { %v1509_v43 = vpop.f32.mrb[3].mxu1  ;;  %1528 = vmatmul.mubr.msk.f32.vlgmr.msra.gmra.mrb[6].mxu1 %vm358_vm2, %v516_v42 }
 0x4a2   : > { %1537 = vmatprep.mubr.msk.f32.mxu1 %vm1829_vm0, %v1830_v1 }
 0x4a4   : > { %v682_v44 = vpop.f32.mrb[4].mxu1 }
 0x4a5   : > { %v1519_v46 = vpop.f32.mrb[5].mxu1  ;;  %1523 = vmatmul.mubr.msk.f32.vlgmr.msra.gmra.mrb[4].mxu0 %vm358_vm2, %v682_v44 }
 0x4a6   : > { %1531 = vmatpush3.xpose.msk.msra.mxu0 %vm358_vm2, %v836_v45  ;;  %1532 = vmatprep.mubr.msk.f32.mxu0 %vm1829_vm0, %v1830_v1 }
 0x4a7   : > { %1540 = vmatprep.subr.mxu0 %v1830_v1 }
 0x4a9   : > { %1533 = vmatmul.mubr.msk.f32.vlgmr.msra.gmra.mrb[6].mxu0 %vm358_vm2, %v834_v47 }
 0x4aa   : > { %1542 = vmatprep.mubr.msk.f32.mxu0 %vm1829_vm0, %v1830_v1  ;;  %1541 = vmatpush3.msra.mxu0 %v998_v4 }
 0x4ab   : > { %1550 = vmatprep.subr.mxu0 %v1830_v1 }
 0x574   : > { %v829_v48 = vpop.f32.mrb[6].mxu1 }
 0x575   : > { %v1529_v49 = vpop.f32.mrb[7].mxu1 }
 0x578   : > { %v756_v50 = vpop.f32.mrb[4].mxu0 }
 0x579   : > { %v830_v51 = vadd.f32 %v829_v48, %v756_v50  ;;  %v1524_v52 = vpop.f32.mrb[5].mxu0 }
 0x57c   : > { %v907_v53 = vpop.f32.mrb[6].mxu0 }
 0x57d   : > { %v1534_v54 = vpop.f32.mrb[7].mxu0  ;;  %v911_v55 = vsel %vm358_vm2, %v907_v53, -inf }
 0x57e   : > { %912 = vmax.xlane.f32.xlu1 %v911_v55 }
 0x58f   : > { %1075 = vrot.lane.b32.xlu1 %v2068_v11, %s1838_s15  ;;  %s1757_s15 = scalar_lea.vmem %s1756_s30, 256 }
 0x590   : > { %p1759_p9 = scmp.lt.s32.totalorder %s1757_s15, %s1751_s22 }
 0x592   : > { %p1760_p12 = por %p1759_p9, %p1758_p7 }
 0x593   : > { %1073 = vrot.lane.b32.xlu1 %v2068_v11, %s1839_s16 }
 0x594   : > { %p1761_p2 = pnand %p1760_p12, %p1754_p3 }
 0x60b   : > { %v913_v56 = vpop.xlane.xlu1 %912 }
 0x60c   : > { %v914_v57 = vsub.f32 %v907_v53, %v913_v56 }
 0x60e   : > { %v915_v58 = vmul.f32 1.442695, %v914_v57 }
 0x60f   : > { %v1076_v0 = vpop.permute.xlu1 %1075 }
 0x610   : > { %1657 = vpow2.f32 %v915_v58 }
 0x613   : > { %v1074_v3 = vpop.permute.xlu1 %1073 }
 0x61a   : > { %v1658_v59 = vpop.eup %1657 }
 0x61b   : > { %v917_v60 = vsel %vm358_vm2, %v1658_v59, 0.0 }
 0x61c   : > { %918 = vadd.xlane.f32.xlu0 %v917_v60 }
 0x632   : > { %922 = vrot.lane.b32.xlu0 %v2068_v11, %s1840_s9 }
 0x6a9   : > { %v919_v61 = vpop.xlane.xlu0 %918 }
 0x6aa   : > { %1659 = vrcp.f32 %v919_v61 }
 0x6ad   : > { %v923_v62 = vpop.permute.xlu0 %922 }
 0x6ae   : > { %1536 = vmatpush3.msra.mxu1 %v923_v62 }
 0x6af   : > { %1545 = vmatprep.subr.mxu1 %v1830_v1 }
 0x6b4   : > { %v1660_v63 = vpop.eup %1659 }
 0x6b5   : > { %v921_v2 = vmul.f32 %v1660_v63, %v1658_v59 }
 0x6b7   : > { %1538 = vmatmul.mubr.msk.f32.vlgmr.msra.gmra.mrb[8].mxu1 %vm358_vm2, %v921_v2 }
 0x6b8   : > { %1546 = vmatpush3.xpose.msk.msra.mxu1 %vm358_vm2, %v1076_v0  ;;  %1547 = vmatprep.mubr.msk.f32.mxu1 %vm1829_vm0, %v1830_v1 }
 0x6b9   : > { %1555 = vmatprep.subr.mxu1 %v1830_v1 }
 0x6bb   : > { %1548 = vmatmul.mubr.msk.f32.vlgmr.msra.gmra.mrb[10].mxu1 %vm358_vm2, %v1074_v3 }
 0x6bc   : > { %1557 = vmatprep.mubr.msk.f32.mxu1 %vm1829_vm0, %v1830_v1 }
 0x78a   : > { %v994_v5 = vpop.f32.mrb[8].mxu1 }
 0x78b   : > { %v1539_v6 = vpop.f32.mrb[9].mxu1  ;;  %1543 = vmatmul.mubr.msk.f32.vlgmr.msra.gmra.mrb[8].mxu0 %vm358_vm2, %v994_v5 }
 0x78c   : > { %1552 = vmatprep.mubr.msk.f32.mxu0 %vm1829_vm0, %v1830_v1  ;;  %v1238_v1 = vld [vmem:[#allocation7 + $0x18] sm:$0xff] }
 0x78d   : > { %1556 = vmatpush3.msra.mxu1 %v1238_v1 }
 0x78e   : > { %v1147_v7 = vpop.f32.mrb[10].mxu1 }
 0x78f   : > { %v1549_v8 = vpop.f32.mrb[11].mxu1  ;;  %v1151_v9 = vsel %vm358_vm2, %v1147_v7, -inf }
 0x790   : > { %1152 = vmax.xlane.f32.xlu0 %v1151_v9 }
 0x7a6   : > { %1162 = vrot.lane.b32.xlu0 %v2068_v11, %s1841_s29 }
 0x81d   : > { %v1153_v10 = vpop.xlane.xlu0 %1152 }
 0x81e   : > { %v1154_v12 = vsub.f32 %v1147_v7, %v1153_v10 }
 0x820   : > { %v1155_v13 = vmul.f32 1.442695, %v1154_v12 }
 0x821   : > { %v1163_v14 = vpop.permute.xlu0 %1162 }
 0x822   : > { %1661 = vpow2.f32 %v1155_v13  ;;  %1551 = vmatpush3.msra.mxu0 %v1163_v14 }
 0x82c   : > { %v1662_v15 = vpop.eup %1661 }
 0x82d   : > { %v1157_v16 = vsel %vm358_vm2, %v1662_v15, 0.0 }
 0x82e   : > { %1158 = vadd.xlane.f32.xlu1 %v1157_v16 }
 0x85e   : > { %v1068_v17 = vpop.f32.mrb[8].mxu0 }
 0x85f   : > { %v1072_v18 = vadd.f32 %v1068_v17, %v830_v51  ;;  %v1544_v19 = vpop.f32.mrb[9].mxu0 }
 0x8bb   : > { %v1159_v20 = vpop.xlane.xlu1 %1158 }
 0x8bc   : > { %1663 = vrcp.f32 %v1159_v20 }
 0x8c6   : > { %v1664_v11 = vpop.eup %1663 }
 0x8c7   : > { %v1161_v21 = vmul.f32 %v1664_v11, %v1662_v15 }
 0x8c9   : > { %1553 = vmatmul.mubr.msk.f32.vlgmr.msra.gmra.mrb[10].mxu0 %vm358_vm2, %v1161_v21 }
 0x99c   : > { %v1234_v22 = vpop.f32.mrb[10].mxu0 }
 0x99d   : > { %v1554_v23 = vpop.f32.mrb[11].mxu0  ;;  %1558 = vmatmul.mubr.msk.f32.vlgmr.msra.gmra.mrb[12].mxu1 %vm358_vm2, %v1234_v22 }
 0xa70   : > { %v1308_v24 = vpop.f32.mrb[12].mxu1 }
 0xa71   : > { %v1312_v26 = vadd.f32 %v1308_v24, %v1072_v18  ;;  %v1559_v27 = vpop.f32.mrb[13].mxu1 }
 0xa73   : > { %v1320_v28 = vadd.f32 %v1455_v25, %v1312_v26 }
 0xa75   : > { %1321 = vst.msk [vmem:[%s268_s8] sm:$0xff] %vm281_vm1, %v1320_v28 }
 0xa76   : > { %1764 = shalt.err (!%p1761_p2)
}
 0xa77   : > { %s1765_s12 = scalar_lea.hbm %s2145_s7, 128  ;;  %s1769_s29 = scalar_lea.hbm %s2195_s5, 256 }
 0xa78   : > { %p1766_p13 = scmp.ne.s32.totalorder %s2145_s7, %s1765_s12  ;;  %p1770_p4 = scmp.lt.u32.totalorder %s2145_s7, %s2195_s5 }
 0xa79   : > { %p1771_p5 = scmp.lt.u32.totalorder %s1769_s29, %s1765_s12  ;;  %p1773_p11 = scmp.lt.u32.totalorder %s1765_s12, %s2145_s7 }
 0xa7a   : > { %p1767_p6 = pnand %p1766_p13, %p2209_p0 }
 0xa7b   : > { %p1772_p8 = por %p1771_p5, %p1770_p4 }
 0xa7c   : > { %p1768_p10 = pneg %p1767_p6 }
 0xa7d   : > { %p1774_p1 = por %p1773_p11, %p1772_p8 }
 0xa7f   : > { %p1775_p3 = pnand %p1774_p1, %p1768_p10 }
 0xa81   : > { %1778 = shalt.err (!%p1775_p3)
}
 0xa82   : > { %1576 = dma.vmem_to_hbm [thread:$0]  (%p2209_p0), %s2147_s10, 128, %s2145_s7, %s1323_s6  }
 0xa83 PF: > { %s1348_s26 = sand.u32 1, %s1809_s18   ;;  %p2210_p7 = scmp.ne.s32.totalorder %s2200_s25, 0 }
 0xa84   : > { %p2211_p9 = scmp.ge.s32.totalorder %s1821_s21, 2  ;;  %s1349_s8 = scalar_lea.sflag [#allocation4], %s1348_s26 }
 0xa86   : > { %p1590_p12 = pnand %p2211_p9, %p2210_p7 }
 0xa88   : > { %1804 = dma.done.wait (!%p1590_p12), %s1349_s8, 128  }
 0xa89   : > { %1806 = vsyncadd (!%p1590_p12), %s1349_s8, 4294967168  ;;  %p19_p2 = scmp.ge.s32.totalorder %s1983_s14, 4   ;;  %s2212_s18 = smov %s1813_s19 }
 0xa8a   : > { %s2213_s19 = smov %s1817_s20  ;;  %s2214_s20 = smov %s1999_s27 }
 0xa8b   : > { %s2215_s21 = smov %s1983_s14  ;;  %21 = sbr.rel (!%p19_p2) target bundleno = 6 (0x6), region = 93 }
 0xa92   :  { %1354 = vsyncpa [#allocation3], 1 }
 0xa93   :  { %1356 = vsyncpa [#allocation3 + $0x1], 1 }
 0xa94   :  { %1357 = vsyncpa [#allocation6], 1 }
 0xa95   :  { %1358 = vsyncpa [#allocation4], 1 }
 0xa96   :  { %1360 = vsyncpa [#allocation4 + $0x1], 1 }

</bundles_post_ra>
